<compile_context>
chip_gen: v7x
topology: tpu7x:2x2x1
jax: 0.10.0
libtpu: 0.0.40
codegen_flags: <defaults>
</compile_context>

<pallas_src>
import functools

import jax
import jax.numpy as jnp
from jax.experimental import pallas as pl
from jax.experimental.pallas import tpu as pltpu


VMEM_LIMIT_BYTES = 48 * 1024 * 1024      # safe on v7x (64 MiB phys) and v5e/v6e
RESIDENT_X_BUDGET_BYTES = 24 * 1024 * 1024  # budget for the (double-buffered) x panel


# --------------------------------------------------------------------------- #
# Tiling / padding helpers
# --------------------------------------------------------------------------- #

def _round_up(x, m):
    return ((x + m - 1) // m) * m


def _choose_node_tile(n, max_tile=512, base=128):
    """Pad n to a multiple of `base` and pick the largest tile <= max_tile that
    divides the padded size (minimal padding, biggest MXU-aligned tile)."""
    n_pad = _round_up(n, base)
    for t in range(min(max_tile, n_pad), base - 1, -base):
        if n_pad % t == 0:
            return t, n_pad
    return base, n_pad


def _pad2(a, rows, cols):
    return jnp.pad(a, ((0, rows - a.shape[0]), (0, cols - a.shape[1])))


def _pad1(a, n):
    return jnp.pad(a, (0, n - a.shape[0]))


# --------------------------------------------------------------------------- #
# Fused kernel:  out = quant(A @ x) @ W + b     (one GCN layer)
# --------------------------------------------------------------------------- #

def _fused_gcn_layer_kernel(adj_ref, x_ref, w_ref, b_ref, o_ref, acc_ref,
                            *, scale, k_tile, x_resident):
    """Grid = (row blocks i, contraction blocks k).  The A @ x contraction is
    accumulated in an f32 VMEM scratch; the CompressGNN cluster quantization
    and the Linear (x @ W + b) epilogue run in the finalize step."""
    k = pl.program_id(1)

    @pl.when(k == 0)
    def _():
        acc_ref[...] = jnp.zeros_like(acc_ref)

    if x_resident:
        # x is the resident operand (whole bf16 feature panel in VMEM);
        # slice the current K sub-tile.
        start = pl.multiple_of(k * k_tile, k_tile)
        x_blk = x_ref[pl.ds(start, k_tile), :]
    else:
        x_blk = x_ref[...]

    # Both operands are already bf16; accumulate in f32 on the MXU.
    acc_ref[...] += jnp.dot(adj_ref[...], x_blk,
                            preferred_element_type=jnp.float32)

    @pl.when(k == pl.num_programs(1) - 1)
    def _():
        h = acc_ref[...]
        if scale is not None:
            # Compressgnn_Cluster quantization, kept in f32 (no bf16 VPU on v5e).
            h = jnp.round(h * scale) * (1.0 / scale)
        # Linear epilogue against the resident weight panel; bias fused.
        y = jnp.dot(h.astype(jnp.bfloat16), w_ref[...],
                    preferred_element_type=jnp.float32) + b_ref[...]
        o_ref[...] = y.astype(o_ref.dtype)


def gcn_fused_layer(adj_bf16, x_bf16, w_bf16, b_f32, *, quant_scale,
                    row_tile, k_tile, out_dtype):
    """One fused GCN layer: quant(A @ x) @ W + b, all padded shapes."""
    n_pad = adj_bf16.shape[0]
    f_pad = x_bf16.shape[1]
    o_pad = w_bf16.shape[1]
    grid = (n_pad // row_tile, n_pad // k_tile)

    # Keep the whole x panel resident in VMEM when it fits (double-buffer
    # budget); otherwise stream (k_tile, f_pad) blocks.
    x_resident = (2 * n_pad * f_pad * 2) <= RESIDENT_X_BUDGET_BYTES
    if x_resident:
        x_spec = pl.BlockSpec((n_pad, f_pad), lambda i, k: (0, 0))
        x_bytes = n_pad * f_pad * 2
    else:
        x_spec = pl.BlockSpec((k_tile, f_pad), lambda i, k: (k, 0))
        x_bytes = (n_pad // row_tile) * n_pad * f_pad * 2

    flops = 2 * n_pad * n_pad * f_pad + 2 * n_pad * f_pad * o_pad
    bytes_accessed = (adj_bf16.size * 2 + x_bytes + w_bf16.size * 2
                      + b_f32.size * 4
                      + n_pad * o_pad * jnp.dtype(out_dtype).itemsize)

    return pl.pallas_call(
        functools.partial(_fused_gcn_layer_kernel, scale=quant_scale,
                          k_tile=k_tile, x_resident=x_resident),
        out_shape=jax.ShapeDtypeStruct((n_pad, o_pad), out_dtype),
        grid=grid,
        in_specs=[
            pl.BlockSpec((row_tile, k_tile), lambda i, k: (i, k)),   # adjacency
            x_spec,                                                  # activations
            pl.BlockSpec((f_pad, o_pad), lambda i, k: (0, 0)),       # W resident
            pl.BlockSpec((1, o_pad), lambda i, k: (0, 0)),           # bias resident
        ],
        out_specs=pl.BlockSpec((row_tile, o_pad), lambda i, k: (i, 0)),
        scratch_shapes=[pltpu.VMEM((row_tile, f_pad), jnp.float32)],
        compiler_params=pltpu.CompilerParams(
            dimension_semantics=("parallel", "arbitrary"),
            vmem_limit_bytes=VMEM_LIMIT_BYTES,
        ),
        cost_estimate=pl.CostEstimate(
            flops=flops, transcendentals=0, bytes_accessed=bytes_accessed),
    )(adj_bf16, x_bf16, w_bf16, b_f32.reshape(1, o_pad))


# --------------------------------------------------------------------------- #
# GCN module forward
# --------------------------------------------------------------------------- #

def init_gcn_params(key, in_features, out_features):
    """Parameter init, shapes match torch.nn.Linear (weights stored [in, out])."""
    k1, k2, k3, k4 = jax.random.split(key, 4)
    bound = 1.0 / jnp.sqrt(in_features)
    w1 = jax.random.uniform(k1, (in_features, in_features), jnp.float32, -bound, bound)
    b1 = jax.random.uniform(k2, (in_features,), jnp.float32, -bound, bound)
    w2 = jax.random.uniform(k3, (in_features, out_features), jnp.float32, -bound, bound)
    b2 = jax.random.uniform(k4, (out_features,), jnp.float32, -bound, bound)
    return {"w1": w1, "b1": b1, "w2": w2, "b2": b2}


def gcn_forward(x, edge_index, edge_weight, params, *, param_H=1):
    n, in_f = x.shape
    out_f = params["w2"].shape[1]

    node_tile, n_pad = _choose_node_tile(n, max_tile=512, base=128)
    f_pad = _round_up(in_f, 128)
    o_pad = _round_up(out_f, 128)

    # Dense weighted adjacency A[dst, src] += w, built directly at the padded
    # shape (one scatter, one bf16 cast -> single HBM materialization).
    src, dst = edge_index[0], edge_index[1]
    if edge_weight is None:
        edge_weight = jnp.ones(src.shape, jnp.float32)
    adj_p = (jnp.zeros((n_pad, n_pad), jnp.float32)
             .at[dst, src].add(edge_weight)
             .astype(jnp.bfloat16))

    # bf16 activations / weights in HBM; biases stay f32.
    x_p = _pad2(x, n_pad, f_pad).astype(jnp.bfloat16)
    w1 = _pad2(params["w1"], f_pad, f_pad).astype(jnp.bfloat16)
    b1 = _pad1(params["b1"].astype(jnp.float32), f_pad)
    w2 = _pad2(params["w2"], f_pad, o_pad).astype(jnp.bfloat16)
    b2 = _pad1(params["b2"].astype(jnp.float32), o_pad)

    scale1 = float(2 ** (param_H + 9))
    scale2 = float(2 ** (param_H + 10))

    # Layer 1: P1 + cluster1 + lin1 fused; intermediate stored bf16.
    h = gcn_fused_layer(adj_p, x_p, w1, b1, quant_scale=scale1,
                        row_tile=node_tile, k_tile=node_tile,
                        out_dtype=jnp.bfloat16)
    # Layer 2: P2 + cluster2 + lin2 fused; final output f32.
    y = gcn_fused_layer(adj_p, h, w2, b2, quant_scale=scale2,
                        row_tile=node_tile, k_tile=node_tile,
                        out_dtype=jnp.float32)

    # torch forward computes F.log_softmax into a discarded temp and returns
    # the pre-softmax x; the dead log_softmax is dropped here.
    return y[:n, :out_f]


# --------------------------------------------------------------------------- #
# Reference (pure JAX, mirrors the kernel's bf16 operand rounding)
# --------------------------------------------------------------------------- #

def _reference_forward(x, edge_index, edge_weight, params, *, param_H=1):
    n = x.shape[0]
    src, dst = edge_index[0], edge_index[1]
    adj = jnp.zeros((n, n), jnp.float32).at[dst, src].add(edge_weight)

    bf = lambda a: a.astype(jnp.bfloat16).astype(jnp.float32)
    quant = lambda v, s: jnp.round(v * s) * (1.0 / s)

    adj_b = bf(adj)
    h = adj_b @ bf(x)
    h = quant(h, 2.0 ** (param_H + 9))
    h = bf(h) @ bf(params["w1"]) + params["b1"]
    h = adj_b @ bf(h)
    h = quant(h, 2.0 ** (param_H + 10))
    h = bf(h) @ bf(params["w2"]) + params["b2"]
    return h


# --------------------------------------------------------------------------- #
# Demo
# --------------------------------------------------------------------------- #

if __name__ == "__main__":
    N = 16            # nodes
    IN_FEATURES = 32
    OUT_FEATURES = 8
    E = 48            # edges

    key = jax.random.PRNGKey(0)
    kx, ke, kw, kp = jax.random.split(key, 4)

    x = jax.random.normal(kx, (N, IN_FEATURES), jnp.float32)
    edge_index = jax.random.randint(ke, (2, E), 0, N, dtype=jnp.int32)
    edge_weight = jax.random.uniform(kw, (E,), jnp.float32)
    params = init_gcn_params(kp, IN_FEATURES, OUT_FEATURES)

    out = gcn_forward(x, edge_index, edge_weight, params, param_H=1)
    out = jax.block_until_ready(out)

    assert out.shape == (N, OUT_FEATURES)
    assert bool(jnp.all(jnp.isfinite(out)))

    ref = _reference_forward(x, edge_index, edge_weight, params, param_H=1)
    assert bool(jnp.allclose(out, ref, atol=2e-2, rtol=2e-2)), (
        float(jnp.max(jnp.abs(out - ref))))

    print("KERNEL_OK")
</pallas_src>

<mosaic_0001>
module attributes {stable_mosaic.version = 11 : i64} {
  func.func @_fused_gcn_layer_kernel(%arg0: i32, %arg1: i32, %arg2: memref<128x128xbf16, #tpu.memory_space<vmem>>, %arg3: memref<128x128xbf16, #tpu.memory_space<vmem>>, %arg4: memref<128x128xbf16, #tpu.memory_space<vmem>>, %arg5: memref<1x128xf32, #tpu.memory_space<vmem>>, %arg6: memref<128x128xbf16, #tpu.memory_space<vmem>>, %arg7: memref<128x128xf32, #tpu.memory_space<vmem>>) attributes {dimension_semantics = [#tpu.dimension_semantics<parallel>, #tpu.dimension_semantics<arbitrary>], iteration_bounds = array<i64: 1, 1>, scalar_prefetch = 0 : i64, scratch_operands = 1 : i64, tpu.core_type = #tpu.core_type<tc>, window_params = [{transform_indices = @transform_0, window_bounds = array<i64: 128, 128>}, {pipeline_mode = #tpu.pipeline_mode<synchronous>, transform_indices = @transform_1, window_bounds = array<i64: 128, 128>}, {pipeline_mode = #tpu.pipeline_mode<synchronous>, transform_indices = @transform_2, window_bounds = array<i64: 128, 128>}, {pipeline_mode = #tpu.pipeline_mode<synchronous>, transform_indices = @transform_3, window_bounds = array<i64: 1, 128>}, {transform_indices = @transform_4, window_bounds = array<i64: 128, 128>}]} {
    %c0_i32 = arith.constant 0 : i32
    %0 = arith.cmpi eq, %arg1, %c0_i32 : i32
    %1 = arith.extui %0 : i1 to i32
    %c0_i32_0 = arith.constant 0 : i32
    %2 = arith.cmpi ne, %1, %c0_i32_0 : i32
    scf.if %2 {
      %cst_9 = arith.constant 0.000000e+00 : f32
      %15 = vector.broadcast %cst_9 : f32 to vector<128x128xf32>
      %c0_10 = arith.constant 0 : index
      %c0_11 = arith.constant 0 : index
      %16 = vector.load %arg7[%c0_10, %c0_11] : memref<128x128xf32, #tpu.memory_space<vmem>>, vector<128x128xf32>
      tpu.vector_store %arg7[%c0_10, %c0_11], %15 {strides = array<i32>} : memref<128x128xf32, #tpu.memory_space<vmem>>, vector<128x128xf32>,
    } else {
    }
    %c128_i32 = arith.constant 128 : i32
    %3 = arith.muli %arg1, %c128_i32 : i32
    %4 = tpu.assume_multiple %3, 128 : i32
    %5 = arith.index_cast %4 : i32 to index
    %c0 = arith.constant 0 : index
    %6 = vector.load %arg3[%5, %c0] : memref<128x128xbf16, #tpu.memory_space<vmem>>, vector<128x128xbf16>
    %c0_1 = arith.constant 0 : index
    %c0_2 = arith.constant 0 : index
    %7 = vector.load %arg7[%c0_1, %c0_2] : memref<128x128xf32, #tpu.memory_space<vmem>>, vector<128x128xf32>
    %c0_3 = arith.constant 0 : index
    %c0_4 = arith.constant 0 : index
    %8 = vector.load %arg2[%c0_3, %c0_4] : memref<128x128xbf16, #tpu.memory_space<vmem>>, vector<128x128xbf16>
    %cst = arith.constant dense<0.000000e+00> : vector<128x128xf32>
    %9 = tpu.matmul %8, %6, %cst {dimension_numbers = #tpu.dot_dimension_numbers<[1], [0], [0], [1], [0, 0, 1, 1], [], []>} : vector<128x128xbf16>, vector<128x128xbf16>, vector<128x128xf32> -> vector<128x128xf32>
    %10 = arith.addf %7, %9 : vector<128x128xf32>
    %c0_5 = arith.constant 0 : index
    %c0_6 = arith.constant 0 : index
    %11 = vector.load %arg7[%c0_5, %c0_6] : memref<128x128xf32, #tpu.memory_space<vmem>>, vector<128x128xf32>
    tpu.vector_store %arg7[%c0_5, %c0_6], %10 {strides = array<i32>} : memref<128x128xf32, #tpu.memory_space<vmem>>, vector<128x128xf32>,
    %c0_i32_7 = arith.constant 0 : i32
    %12 = arith.cmpi eq, %arg1, %c0_i32_7 : i32
    %13 = arith.extui %12 : i1 to i32
    %c0_i32_8 = arith.constant 0 : i32
    %14 = arith.cmpi ne, %13, %c0_i32_8 : i32
    scf.if %14 {
      %c0_9 = arith.constant 0 : index
      %c0_10 = arith.constant 0 : index
      %15 = vector.load %arg7[%c0_9, %c0_10] : memref<128x128xf32, #tpu.memory_space<vmem>>, vector<128x128xf32>
      %cst_11 = arith.constant 1.024000e+03 : f32
      %16 = vector.broadcast %cst_11 : f32 to vector<128x128xf32>
      %17 = arith.mulf %15, %16 : vector<128x128xf32>
      %18 = math.roundeven %17 : vector<128x128xf32>
      %cst_12 = arith.constant 9.765625E-4 : f32
      %19 = vector.broadcast %cst_12 : f32 to vector<128x128xf32>
      %20 = arith.mulf %18, %19 : vector<128x128xf32>
      %21 = arith.truncf %20 : vector<128x128xf32> to vector<128x128xbf16>
      %c0_13 = arith.constant 0 : index
      %c0_14 = arith.constant 0 : index
      %22 = vector.load %arg4[%c0_13, %c0_14] : memref<128x128xbf16, #tpu.memory_space<vmem>>, vector<128x128xbf16>
      %cst_15 = arith.constant dense<0.000000e+00> : vector<128x128xf32>
      %23 = tpu.matmul %21, %22, %cst_15 {dimension_numbers = #tpu.dot_dimension_numbers<[1], [0], [0], [1], [0, 0, 1, 1], [], []>} : vector<128x128xbf16>, vector<128x128xbf16>, vector<128x128xf32> -> vector<128x128xf32>
      %c0_16 = arith.constant 0 : index
      %c0_17 = arith.constant 0 : index
      %24 = vector.load %arg5[%c0_16, %c0_17] : memref<1x128xf32, #tpu.memory_space<vmem>>, vector<1x128xf32>
      %25 = vector.broadcast %24 : vector<1x128xf32> to vector<128x128xf32>
      %26 = arith.addf %23, %25 : vector<128x128xf32>
      %27 = arith.truncf %26 : vector<128x128xf32> to vector<128x128xbf16>
      %c0_18 = arith.constant 0 : index
      %c0_19 = arith.constant 0 : index
      %28 = vector.load %arg6[%c0_18, %c0_19] : memref<128x128xbf16, #tpu.memory_space<vmem>>, vector<128x128xbf16>
      tpu.vector_store %arg6[%c0_18, %c0_19], %27 {strides = array<i32>} : memref<128x128xbf16, #tpu.memory_space<vmem>>, vector<128x128xbf16>,
    } else {
    }
    return
  }
  func.func @transform_0(%arg0: i32, %arg1: i32) -> (i32, i32) {
    %c0_i32 = arith.constant 0 : i32
    return %arg0, %arg1 : i32, i32
  }
  func.func @transform_1(%arg0: i32, %arg1: i32) -> (i32, i32) {
    %c0_i32 = arith.constant 0 : i32
    %c0_i32_0 = arith.constant 0 : i32
    %c0_i32_1 = arith.constant 0 : i32
    return %c0_i32, %c0_i32_0 : i32, i32
  }
  func.func @transform_2(%arg0: i32, %arg1: i32) -> (i32, i32) {
    %c0_i32 = arith.constant 0 : i32
    %c0_i32_0 = arith.constant 0 : i32
    %c0_i32_1 = arith.constant 0 : i32
    return %c0_i32, %c0_i32_0 : i32, i32
  }
  func.func @transform_3(%arg0: i32, %arg1: i32) -> (i32, i32) {
    %c0_i32 = arith.constant 0 : i32
    %c0_i32_0 = arith.constant 0 : i32
    %c0_i32_1 = arith.constant 0 : i32
    return %c0_i32, %c0_i32_0 : i32, i32
  }
  func.func @transform_4(%arg0: i32, %arg1: i32) -> (i32, i32) {
    %c0_i32 = arith.constant 0 : i32
    %c0_i32_0 = arith.constant 0 : i32
    return %arg0, %c0_i32 : i32, i32
  }
}

</mosaic_0001>

<bundles_post_ra>
// kernel: tpu_custom_call.1
= control target key start
LH: loop header
LB: loop body
LE: loop exit
PB: predicated region body
PF: predicated region fallthrough
CT: control target
= control target key end

     0   :  { %9 = vsyncpa [#allocation4], 0  ;;  %s1142_s0 = inlined_call_operand.hbm [shape: bf16[128,128], index: 0, kind: input, shape index: {}]   ;;  %s1143_s1 = inlined_call_operand.hbm [shape: bf16[128,128], index: 1, kind: input, shape index: {}]   ;;  %s1144_s2 = inlined_call_operand.hbm [shape: bf16[128,128], index: 2, kind: input, shape index: {}]   ;;  %s1145_s3 = inlined_call_operand.vmem [shape: f32[1,128], index: 3, kind: input, shape index: {}]   ;;  %s1146_s4 = inlined_call_operand.hbm [shape: bf16[128,128], index: 4, kind: output, shape index: {}]  }
   0x1   :  { %10 = vsyncpa [#allocation7], 0 }
   0x2   :  { %11 = vsyncpa [#allocation5], 0  ;;  %s1041_s15 = smov [#allocation6]   ;;  %s1042_s17 = smov [#allocation3]  }
   0x3   :  { %s29_s16 = sshll.u32 %s1041_s15, 4  ;;  %s17_s18 = sshll.u32 %s1042_s17, 4  ;;  %s30_s16 = int_to_ptr.vmem [resolvable:$true] %s29_s16  ;;  %s1072_s18 = int_to_ptr.vmem [resolvable:$true] %s17_s18 }
   0x4   :  { %s947_s21 = scalar_lea.hbm %s1143_s1, 1024 }
   0x5   :  { %p948_p0 = scmp.ne.s32.totalorder %s1143_s1, %s947_s21  ;;  %p951_p1 = scmp.lt.u32.totalorder %s947_s21, %s1143_s1 }
   0x7   :  { %p953_p2 = pnand %p951_p1, %p948_p0 }
   0x9   :  { %956 = shalt.err (!%p953_p2)
}
   0xa   :  { %s957_s26 = scalar_lea.vmem %s30_s16, 1024  ;;  %p962_p4 = scmp.lt.s32.totalorder %s30_s16, %s30_s16 }
   0xb   :  { %p958_p3 = scmp.ne.s32.totalorder %s30_s16, %s957_s26  ;;  %p963_p5 = scmp.lt.s32.totalorder %s957_s26, %s957_s26 }
   0xd   :  { %p964_p6 = por %p963_p5, %p962_p4 }
   0xf   :  { %p965_p7 = pnand %p964_p6, %p958_p3 }
  0x11   :  { %968 = shalt.err (!%p965_p7)
}
  0x12   :  { %s1043_s27 = smov 64   ;;  %s1044_s28 = smov 4  }
  0x13   :  { %35 = dma.hbm_to_vmem [thread:$0]  %s1143_s1, 1024, %s30_s16, [#allocation7], %s1043_s27, %s1043_s27, %s1044_s28  }
  0x14   :  { %s969_s7 = scalar_lea.hbm %s1142_s0, 1024 }
  0x15   :  { %p970_p8 = scmp.ne.s32.totalorder %s1142_s0, %s969_s7  ;;  %p973_p9 = scmp.lt.u32.totalorder %s969_s7, %s1142_s0 }
  0x17   :  { %p975_p10 = pnand %p973_p9, %p970_p8 }
  0x19   :  { %978 = shalt.err (!%p975_p10)
}
  0x1a   :  { %s979_s12 = scalar_lea.vmem %s1072_s18, 1024  ;;  %p984_p12 = scmp.lt.s32.totalorder %s1072_s18, %s1072_s18 }
  0x1b   :  { %p980_p11 = scmp.ne.s32.totalorder %s1072_s18, %s979_s12  ;;  %p985_p13 = scmp.lt.s32.totalorder %s979_s12, %s979_s12 }
  0x1d   :  { %p986_p0 = por %p985_p13, %p984_p12 }
  0x1f   :  { %p987_p1 = pnand %p986_p0, %p980_p11 }
  0x21   :  { %990 = shalt.err (!%p987_p1)
}
  0x22   :  { %23 = dma.hbm_to_vmem [thread:$0]  %s1142_s0, 1024, %s1072_s18, [#allocation4], %s1043_s27, %s1043_s27, %s1044_s28  }
  0x23   :  { %s1045_s14 = smov [#allocation8]   ;;  %s991_s19 = scalar_lea.hbm %s1144_s2, 1024 }
  0x24   :  { %s41_s15 = sshll.u32 %s1045_s14, 4  ;;  %p992_p2 = scmp.ne.s32.totalorder %s1144_s2, %s991_s19  ;;  %s42_s15 = int_to_ptr.vmem [resolvable:$true] %s41_s15 }
  0x25   :  { %p995_p3 = scmp.lt.u32.totalorder %s991_s19, %s1144_s2 }
  0x27   :  { %p997_p4 = pnand %p995_p3, %p992_p2 }
  0x29   :  { %1000 = shalt.err (!%p997_p4)
}
  0x2a   :  { %s1001_s24 = scalar_lea.vmem %s42_s15, 1024  ;;  %p1006_p6 = scmp.lt.s32.totalorder %s42_s15, %s42_s15 }
  0x2b   :  { %p1002_p5 = scmp.ne.s32.totalorder %s42_s15, %s1001_s24  ;;  %p1007_p7 = scmp.lt.s32.totalorder %s1001_s24, %s1001_s24 }
  0x2d   :  { %p1008_p8 = por %p1007_p7, %p1006_p6 }
  0x2f   :  { %p1009_p9 = pnand %p1008_p8, %p1002_p5 }
  0x31   :  { %1012 = shalt.err (!%p1009_p9)
}
  0x32   :  { %47 = dma.hbm_to_vmem [thread:$0]  %s1144_s2, 1024, %s42_s15, [#allocation7], %s1043_s27, %s1043_s27, %s1044_s28  }
  0x33   :  { %1035 = dma.done.wait [#allocation4], 1024  }
  0x34   :  { %1036 = vsyncadd [#allocation4], 4294966272 }
  0x35   :  { %1037 = dma.done.wait [#allocation7], 2048  }
  0x36   :  { %1038 = vsyncadd [#allocation7], 4294965248  ;;  %v923_v0 = vld [vmem:[#allocation6] sm:$0xff]   ;;  %v924_v1 = vld [vmem:[#allocation6 + $0x8] sm:$0xff]  }
  0x37   :  { %837 = vmatprep.subr.bf16.mxu0 %v923_v0  ;;  %v925_v2 = vld [vmem:[#allocation6 + $0x10] sm:$0xff]   ;;  %v926_v3 = vld [vmem:[#allocation6 + $0x18] sm:$0xff]   ;;  %v931_v4 = vld [vmem:[#allocation3] sm:$0xff]  }
  0x38   :  { %838 = vmatpush3.bf16.msra.mxu0 %v923_v0  ;;  %853 = vmatprep.mubr.bf16.mxu0 %v931_v4  ;;  %v927_v5 = vld [vmem:[#allocation6 + $0x20] sm:$0xff]   ;;  %v928_v6 = vld [vmem:[#allocation6 + $0x28] sm:$0xff]   ;;  %v929_v9 = vld [vmem:[#allocation6 + $0x30] sm:$0xff]  }
  0x39   :  { %839 = vmatprep.subr.bf16.mxu0 %v924_v1  ;;  %v939_v7 = vld [vmem:[#allocation8] sm:$0xff]   ;;  %v940_v8 = vld [vmem:[#allocation8 + $0x8] sm:$0xff]   ;;  %v941_v10 = vld [vmem:[#allocation8 + $0x10] sm:$0xff]  }
  0x3a   :  { %869 = vmatprep.subr.bf16.mxu1 %v939_v7  ;;  %v930_v11 = vld [vmem:[#allocation6 + $0x38] sm:$0xff]   ;;  %v943_v13 = vld [vmem:[#allocation8 + $0x20] sm:$0xff]   ;;  %v932_v14 = vld [vmem:[#allocation3 + $0x8] sm:$0xff]  }
  0x3b   :  { %870 = vmatpush3.bf16.msra.mxu1 %v939_v7  ;;  %v942_v12 = vld [vmem:[#allocation8 + $0x18] sm:$0xff]   ;;  %v933_v15 = vld [vmem:[#allocation3 + $0x10] sm:$0xff]   ;;  %v935_v17 = vld [vmem:[#allocation3 + $0x20] sm:$0xff]  }
  0x3c   :  { %840 = vmatpush3.bf16.msra.mxu0 %v924_v1  ;;  %871 = vmatprep.subr.bf16.mxu1 %v940_v8  ;;  %v934_v16 = vld [vmem:[#allocation3 + $0x18] sm:$0xff]   ;;  %v936_v18 = vld [vmem:[#allocation3 + $0x28] sm:$0xff]   ;;  %v937_v19 = vld [vmem:[#allocation3 + $0x30] sm:$0xff]  }
  0x3d   :  { %841 = vmatprep.subr.bf16.mxu0 %v925_v2  ;;  %v938_v20 = vld [vmem:[#allocation3 + $0x38] sm:$0xff]   ;;  %v944_v21 = vld [vmem:[#allocation8 + $0x28] sm:$0xff]   ;;  %v945_v22 = vld [vmem:[#allocation8 + $0x30] sm:$0xff]  }
  0x3e   :  { %v946_v23 = vld [vmem:[#allocation8 + $0x38] sm:$0xff]  }
  0x3f   :  { %872 = vmatpush3.bf16.msra.mxu1 %v940_v8 }
  0x40   :  { %842 = vmatpush3.bf16.msra.mxu0 %v925_v2  ;;  %873 = vmatprep.subr.bf16.mxu1 %v941_v10 }
  0x41   :  { %843 = vmatprep.subr.bf16.mxu0 %v926_v3 }
  0x43   :  { %874 = vmatpush3.bf16.msra.mxu1 %v941_v10 }
  0x44   :  { %844 = vmatpush3.bf16.msra.mxu0 %v926_v3  ;;  %875 = vmatprep.subr.bf16.mxu1 %v942_v12 }
  0x45   :  { %845 = vmatprep.subr.bf16.mxu0 %v927_v5 }
  0x47   :  { %876 = vmatpush3.bf16.msra.mxu1 %v942_v12 }
  0x48   :  { %846 = vmatpush3.bf16.msra.mxu0 %v927_v5  ;;  %877 = vmatprep.subr.bf16.mxu1 %v943_v13 }
  0x49   :  { %847 = vmatprep.subr.bf16.mxu0 %v928_v6 }
  0x4b   :  { %878 = vmatpush3.bf16.msra.mxu1 %v943_v13 }
  0x4c   :  { %848 = vmatpush3.bf16.msra.mxu0 %v928_v6  ;;  %879 = vmatprep.subr.bf16.mxu1 %v944_v21 }
  0x4d   :  { %849 = vmatprep.subr.bf16.mxu0 %v929_v9 }
  0x4f   :  { %880 = vmatpush3.bf16.msra.mxu1 %v944_v21 }
  0x50   :  { %850 = vmatpush3.bf16.msra.mxu0 %v929_v9  ;;  %881 = vmatprep.subr.bf16.mxu1 %v945_v22 }
  0x51   :  { %851 = vmatprep.subr.bf16.mxu0 %v930_v11 }
  0x53   :  { %882 = vmatpush3.bf16.msra.mxu1 %v945_v22 }
  0x54   :  { %852 = vmatpush3.bf16.msra.mxu0 %v930_v11  ;;  %883 = vmatprep.subr.bf16.mxu1 %v946_v23 }
  0x57   :  { %854 = vmatmul.mubr.bf16.vlgmr.msra.gmra.mrb[0].mxu0 %v932_v14  ;;  %884 = vmatpush3.bf16.msra.mxu1 %v946_v23 }
  0x58   :  { %857 = vmatprep.mubr.bf16.mxu0 %v933_v15 }
  0x5f   :  { %858 = vmatmul.mubr.bf16.gmra.mrb[4].mxu0 %v934_v16 }
  0x60   :  { %861 = vmatprep.mubr.bf16.mxu0 %v935_v17 }
  0x67   :  { %862 = vmatmul.mubr.bf16.gmra.mrb[8].mxu0 %v936_v18 }
  0x68   :  { %865 = vmatprep.mubr.bf16.mxu0 %v937_v19 }
  0x6f   :  { %866 = vmatmul.mubr.bf16.gmra.mrb[12].mxu0 %v938_v20 }
 0x12a   :  { %v855_v24 = vpop.f32.mrb[0].mxu0 }
 0x12b   :  { %v379_v25 = vmul.f32 1024.0, %v855_v24  ;;  %v263_v26 = vpop.f32.mrb[1].mxu0 }
 0x12c   :  { %v377_v27 = vmul.f32 1024.0, %v263_v26  ;;  %v856_v28 = vpop.f32.mrb[2].mxu0 }
 0x12d   :  { %v903_v29 = vround.rtne.f32 %v379_v25  ;;  %v380_v30 = vmul.f32 1024.0, %v856_v28  ;;  %v266_v31 = vpop.f32.mrb[3].mxu0 }
 0x12e   :  { %v901_v32 = vround.rtne.f32 %v377_v27  ;;  %v378_v33 = vmul.f32 1024.0, %v266_v31 }
 0x12f   :  { %v904_v34 = vround.rtne.f32 %v380_v30  ;;  %v411_v36 = vmul.f32 0.0009765625, %v903_v29 }
 0x130   :  { %v902_v35 = vround.rtne.f32 %v378_v33  ;;  %v409_v38 = vmul.f32 0.0009765625, %v901_v32  ;;  %v717_v33 = vld [vmem:[%s1145_s3] ss:$0 sm:$0xff]  ;;  %s1046_s3 = smov [#allocation9]  }
 0x131   :  { %v412_v37 = vmul.f32 0.0009765625, %v904_v34  ;;  %s686_s26 = sshll.u32 %s1046_s3, 4  ;;  %s687_s26 = int_to_ptr.vmem [resolvable:$true] %s686_s26 }
 0x132   :  { %v410_v39 = vmul.f32 0.0009765625, %v902_v35  ;;  %v859_v40 = vpop.f32.mrb[4].mxu0  ;;  %s1013_s29 = scalar_lea.vmem %s687_s26, 1024  ;;  %p1018_p11 = scmp.lt.s32.totalorder %s687_s26, %s687_s26 }
 0x133   :  { %v426_v41 = vpack.c.bf16 %v412_v37, %v411_v36  ;;  %v383_v42 = vmul.f32 1024.0, %v859_v40  ;;  %v279_v43 = vpop.f32.mrb[5].mxu0  ;;  %p1014_p10 = scmp.ne.s32.totalorder %s687_s26, %s1013_s29  ;;  %p1019_p12 = scmp.lt.s32.totalorder %s1013_s29, %s1013_s29 }
 0x134   :  { %v381_v44 = vmul.f32 1024.0, %v279_v43  ;;  %v860_v45 = vpop.f32.mrb[6].mxu0  ;;  %v425_v46 = vpack.c.bf16 %v410_v39, %v409_v38 }
 0x135   :  { %v907_v47 = vround.rtne.f32 %v383_v42  ;;  %v384_v48 = vmul.f32 1024.0, %v860_v45  ;;  %v282_v49 = vpop.f32.mrb[7].mxu0  ;;  %p1020_p13 = por %p1019_p12, %p1018_p11 }
 0x136   :  { %v905_v50 = vround.rtne.f32 %v381_v44  ;;  %v382_v51 = vmul.f32 1024.0, %v282_v49  ;;  %885 = vmatprep.mubr.bf16.mxu1 %v425_v46 }
 0x137   :  { %v908_v52 = vround.rtne.f32 %v384_v48  ;;  %886 = vmatmul.mubr.bf16.vlgmr.msra.gmra.mrb[0].mxu1 %v426_v41  ;;  %v415_v54 = vmul.f32 0.0009765625, %v907_v47  ;;  %p1021_p0 = pnand %p1020_p13, %p1014_p10 }
 0x138   :  { %v906_v53 = vround.rtne.f32 %v382_v51  ;;  %v413_v56 = vmul.f32 0.0009765625, %v905_v50 }
 0x139   :  { %v416_v55 = vmul.f32 0.0009765625, %v908_v52 }
 0x13a   :  { %v414_v57 = vmul.f32 0.0009765625, %v906_v53  ;;  %v863_v58 = vpop.f32.mrb[8].mxu0 }
 0x13b   :  { %v428_v59 = vpack.c.bf16 %v416_v55, %v415_v54  ;;  %v387_v60 = vmul.f32 1024.0, %v863_v58  ;;  %v295_v61 = vpop.f32.mrb[9].mxu0 }
 0x13c   :  { %v427_v62 = vpack.c.bf16 %v414_v57, %v413_v56  ;;  %v385_v63 = vmul.f32 1024.0, %v295_v61  ;;  %v864_v0 = vpop.f32.mrb[10].mxu0 }
 0x13d   :  { %v911_v1 = vround.rtne.f32 %v387_v60  ;;  %v388_v2 = vmul.f32 1024.0, %v864_v0  ;;  %v298_v3 = vpop.f32.mrb[11].mxu0 }
 0x13e   :  { %v909_v4 = vround.rtne.f32 %v385_v63  ;;  %v386_v5 = vmul.f32 1024.0, %v298_v3  ;;  %889 = vmatprep.mubr.bf16.mxu1 %v427_v62 }
 0x13f   :  { %v912_v6 = vround.rtne.f32 %v388_v2  ;;  %890 = vmatmul.mubr.bf16.gmra.mrb[4].mxu1 %v428_v59  ;;  %v419_v8 = vmul.f32 0.0009765625, %v911_v1 }
 0x140   :  { %v910_v7 = vround.rtne.f32 %v386_v5  ;;  %v417_v10 = vmul.f32 0.0009765625, %v909_v4 }
 0x141   :  { %v420_v9 = vmul.f32 0.0009765625, %v912_v6 }
 0x142   :  { %v418_v11 = vmul.f32 0.0009765625, %v910_v7  ;;  %v867_v12 = vpop.f32.mrb[12].mxu0 }
 0x143   :  { %v430_v13 = vpack.c.bf16 %v420_v9, %v419_v8  ;;  %v391_v14 = vmul.f32 1024.0, %v867_v12  ;;  %v311_v15 = vpop.f32.mrb[13].mxu0 }
 0x144   :  { %v429_v16 = vpack.c.bf16 %v418_v11, %v417_v10  ;;  %v389_v17 = vmul.f32 1024.0, %v311_v15  ;;  %v868_v18 = vpop.f32.mrb[14].mxu0 }
 0x145   :  { %v915_v19 = vround.rtne.f32 %v391_v14  ;;  %v392_v20 = vmul.f32 1024.0, %v868_v18  ;;  %v314_v21 = vpop.f32.mrb[15].mxu0 }
 0x146   :  { %v913_v22 = vround.rtne.f32 %v389_v17  ;;  %v390_v23 = vmul.f32 1024.0, %v314_v21  ;;  %893 = vmatprep.mubr.bf16.mxu1 %v429_v16 }
 0x147   :  { %v916_v24 = vround.rtne.f32 %v392_v20  ;;  %894 = vmatmul.mubr.bf16.gmra.mrb[8].mxu1 %v430_v13  ;;  %v423_v26 = vmul.f32 0.0009765625, %v915_v19 }
 0x148   :  { %v914_v25 = vround.rtne.f32 %v390_v23  ;;  %v421_v28 = vmul.f32 0.0009765625, %v913_v22 }
 0x149   :  { %v424_v27 = vmul.f32 0.0009765625, %v916_v24 }
 0x14a   :  { %v422_v29 = vmul.f32 0.0009765625, %v914_v25 }
 0x14b   :  { %v432_v30 = vpack.c.bf16 %v424_v27, %v423_v26 }
 0x14c   :  { %v431_v31 = vpack.c.bf16 %v422_v29, %v421_v28 }
 0x14e   :  { %897 = vmatprep.mubr.bf16.mxu1 %v431_v31 }
 0x14f   :  { %898 = vmatmul.mubr.bf16.gmra.mrb[12].mxu1 %v432_v30 }
 0x20a   :  { %v887_v32 = vpop.f32.mrb[0].mxu1 }
 0x20b   :  { %v538_v34 = vpop.f32.mrb[1].mxu1  ;;  %v547_v36 = vadd.f32 %v887_v32, %v717_v33 }
 0x20c   :  { %v888_v35 = vpop.f32.mrb[2].mxu1  ;;  %v539_v39 = vadd.f32 %v717_v33, %v538_v34 }
 0x20d   :  { %v550_v37 = vadd.f32 %v888_v35, %v717_v33  ;;  %v541_v38 = vpop.f32.mrb[3].mxu1 }
 0x20e   :  { %v542_v40 = vadd.f32 %v717_v33, %v541_v38 }
 0x20f   :  { %v766_v41 = vpack.c.bf16 %v550_v37, %v547_v36 }
 0x210   :  { %v761_v42 = vpack.c.bf16 %v542_v40, %v539_v39 }
 0x211   :  { %798 = vst [vmem:[#allocation9 + $0x8] sm:$0xff] %v766_v41  }
 0x212   :  { %762 = vst [vmem:[#allocation9] sm:$0xff] %v761_v42   ;;  %v891_v43 = vpop.f32.mrb[4].mxu1 }
 0x213   :  { %v554_v44 = vpop.f32.mrb[5].mxu1  ;;  %v563_v46 = vadd.f32 %v891_v43, %v717_v33 }
 0x214   :  { %v892_v45 = vpop.f32.mrb[6].mxu1  ;;  %v555_v49 = vadd.f32 %v717_v33, %v554_v44 }
 0x215   :  { %v566_v47 = vadd.f32 %v892_v45, %v717_v33  ;;  %v557_v48 = vpop.f32.mrb[7].mxu1 }
 0x216   :  { %v558_v50 = vadd.f32 %v717_v33, %v557_v48 }
 0x217   :  { %v776_v51 = vpack.c.bf16 %v566_v47, %v563_v46 }
 0x218   :  { %v771_v52 = vpack.c.bf16 %v558_v50, %v555_v49 }
 0x219   :  { %800 = vst [vmem:[#allocation9 + $0x18] sm:$0xff] %v776_v51  }
 0x21a   :  { %799 = vst [vmem:[#allocation9 + $0x10] sm:$0xff] %v771_v52   ;;  %v895_v53 = vpop.f32.mrb[8].mxu1 }
 0x21b   :  { %v570_v54 = vpop.f32.mrb[9].mxu1  ;;  %v579_v56 = vadd.f32 %v895_v53, %v717_v33 }
 0x21c   :  { %v896_v55 = vpop.f32.mrb[10].mxu1  ;;  %v571_v59 = vadd.f32 %v717_v33, %v570_v54 }
 0x21d   :  { %v582_v57 = vadd.f32 %v896_v55, %v717_v33  ;;  %v573_v58 = vpop.f32.mrb[11].mxu1 }
 0x21e   :  { %v574_v60 = vadd.f32 %v717_v33, %v573_v58 }
 0x21f   :  { %v786_v61 = vpack.c.bf16 %v582_v57, %v579_v56 }
 0x220   :  { %v781_v62 = vpack.c.bf16 %v574_v60, %v571_v59 }
 0x221   :  { %802 = vst [vmem:[#allocation9 + $0x28] sm:$0xff] %v786_v61  }
 0x222   :  { %801 = vst [vmem:[#allocation9 + $0x20] sm:$0xff] %v781_v62   ;;  %v899_v63 = vpop.f32.mrb[12].mxu1 }
 0x223   :  { %v586_v0 = vpop.f32.mrb[13].mxu1  ;;  %v595_v2 = vadd.f32 %v899_v63, %v717_v33 }
 0x224   :  { %v900_v1 = vpop.f32.mrb[14].mxu1  ;;  %v587_v5 = vadd.f32 %v717_v33, %v586_v0 }
 0x225   :  { %v598_v3 = vadd.f32 %v900_v1, %v717_v33  ;;  %v589_v4 = vpop.f32.mrb[15].mxu1 }
 0x226   :  { %v590_v6 = vadd.f32 %v717_v33, %v589_v4 }
 0x227   :  { %v796_v7 = vpack.c.bf16 %v598_v3, %v595_v2 }
 0x228   :  { %v791_v8 = vpack.c.bf16 %v590_v6, %v587_v5 }
 0x229   :  { %804 = vst [vmem:[#allocation9 + $0x38] sm:$0xff] %v796_v7  }
 0x22a   :  { %803 = vst [vmem:[#allocation9 + $0x30] sm:$0xff] %v791_v8  }
 0x22b   :  { %1024 = shalt.err (!%p1021_p0)
}
 0x22c   :  { %s1025_s6 = scalar_lea.hbm %s1146_s4, 1024 }
 0x22d   :  { %p1026_p1 = scmp.ne.s32.totalorder %s1146_s4, %s1025_s6  ;;  %p1029_p2 = scmp.lt.u32.totalorder %s1025_s6, %s1146_s4 }
 0x22f   :  { %p1031_p3 = pnand %p1029_p2, %p1026_p1 }
 0x231   :  { %1034 = shalt.err (!%p1031_p3)
}
 0x232   :  { %692 = dma.vmem_to_hbm [thread:$0]  %s687_s26, 1024, %s1146_s4, [#allocation5], %s1043_s27, %s1043_s27, %s1044_s28  }
 0x233   :  { %1039 = dma.done.wait [#allocation5], 1024  }
 0x234   :  { %1040 = vsyncadd [#allocation5], 4294966272 }
 0x235   :  { %696 = vsyncpa [#allocation4], 1 }
 0x236   :  { %697 = vsyncpa [#allocation7], 1 }
 0x237   :  { %698 = vsyncpa [#allocation5], 1 }

</bundles_post_ra>
